<compile_context>
chip_gen: v6e
topology: v6e:2x2x1
jax: 0.10.0
libtpu: 0.0.40
codegen_flags: <defaults>
</compile_context>

<pallas_src>
import jax
import jax.numpy as jnp
from jax.experimental import pallas as pl
from jax.experimental.pallas import tpu as pltpu

# Problem sizes implied by NVLocate1.__init__ / forward:
B = 2
T = 8            # iminfo.timesteps
IMG = 8          # iminfo.image_xpixel == iminfo.image_ypixel
HW = IMG * IMG
NVNUM = 4        # nvinfo.xnum * nvinfo.ynum = 2 * 2
NCURVE = 6
NFLAT = NCURVE * NVNUM      # 24
HID = 100
OUT = 100                   # 10 x 10 label grid
KIN = T * HW                # 512 (fused conv contraction dim, lane-aligned)


def nvlocate_kernel(x_ref, wf_ref, wfc1_ref, wfc23_ref, bias_ref, out_ref):
    # Bias rows: static slices of the packed (4, 100) f32 array (no extra DMAs).
    bf   = bias_ref[0:1, :NFLAT]     # (1, 24)   fused conv bias
    bfc1 = bias_ref[1:2, :]          # (1, 100)
    bfc2 = bias_ref[2:3, :]          # (1, 100)
    bfc3 = bias_ref[3:4, :]          # (1, 100)

    # Fused convMix1 + convCurve + ReLU:
    #   (B, 512) bf16 @ (512, 24) bf16 -> f32, already in the c-major /
    #   NV-minor flatten order fc1 expects.
    flat = jnp.dot(x_ref[...], wf_ref[...],
                   preferred_element_type=jnp.float32) + bf
    flat = jnp.maximum(flat, 0.0)

    # fc1 + ReLU  (f32 activation x bf16 weight -> promoted f32 matmul).
    h1 = jnp.dot(flat, wfc1_ref[...],
                 preferred_element_type=jnp.float32) + bfc1
    h1 = jnp.maximum(h1, 0.0)

    # fc2 + sigmoid (exact divide; exp on the EUP).
    z2 = jnp.dot(h1, wfc23_ref[0],
                 preferred_element_type=jnp.float32) + bfc2
    h2 = 1.0 / (1.0 + jnp.exp(-z2))

    # fc3 + softmax over the 100 (unpadded) output lanes -> no mask needed.
    h3 = jnp.dot(h2, wfc23_ref[1],
                 preferred_element_type=jnp.float32) + bfc3
    m = jnp.max(h3, axis=-1, keepdims=True)
    e = jnp.exp(h3 - m)
    out_ref[...] = e / jnp.sum(e, axis=-1, keepdims=True)


def prepare_params(params):
    """One-time weight prep (run once, outside the per-call path).

    Fuses convMix1 + convCurve into a single matmul:
      W_fused[c*NV+n, t*HW+h] = w2[c,t] * w1[n,h]
      b_fused[c*NV+n]         = b1[n] * sum_t w2[c,t] + b2[c]
    and packs / casts everything the kernel consumes.
    """
    (w1, b1, w2, b2, wfc1, bfc1, wfc2, bfc2, wfc3, bfc3) = params

    w1m = w1.reshape(NVNUM, HW).astype(jnp.float32)              # (4, 64)
    w2m = w2.reshape(NCURVE, T).astype(jnp.float32)              # (6, 8)
    wf = jnp.einsum('ct,nh->cnth', w2m, w1m).reshape(NFLAT, KIN)  # (24, 512)
    bfv = (b1[None, :] * jnp.sum(w2m, axis=1)[:, None]
           + b2[:, None]).reshape(NFLAT)                          # (24,)

    wf_t   = wf.T.astype(jnp.bfloat16)                            # (512, 24)
    wfc1_t = wfc1.T.astype(jnp.bfloat16)                          # (24, 100)
    wfc23  = jnp.stack([wfc2.T, wfc3.T]).astype(jnp.bfloat16)     # (2, 100, 100)

    biases = jnp.zeros((4, HID), jnp.float32)
    biases = biases.at[0, :NFLAT].set(bfv)
    biases = biases.at[1].set(bfc1)
    biases = biases.at[2].set(bfc2)
    biases = biases.at[3].set(bfc3)
    return (wf_t, wfc1_t, wfc23, biases)


@jax.jit
def nvlocate_forward(x, prepped):
    wf_t, wfc1_t, wfc23, biases = prepped
    Bn = x.shape[0]
    x2 = x.reshape(Bn, KIN).astype(jnp.bfloat16)                  # (B, 512)

    cost = pl.CostEstimate(
        flops=2 * Bn * (KIN * NFLAT + NFLAT * HID + HID * HID + HID * OUT),
        transcendentals=Bn * (HID + OUT),
        bytes_accessed=(Bn * KIN * 2 + KIN * NFLAT * 2 + NFLAT * HID * 2
                        + 2 * HID * HID * 2 + 4 * HID * 4 + Bn * OUT * 4),
    )

    # Single whole-array invocation; everything fits VMEM trivially (<100 KiB).
    # NOTE: for large-batch workloads, tile Bn over a "parallel" grid axis
    # (e.g. 256-row tiles) so v7x's two TensorCores each take half the batch.
    out = pl.pallas_call(
        nvlocate_kernel,
        out_shape=jax.ShapeDtypeStruct((Bn, OUT), jnp.float32),
        in_specs=[pl.BlockSpec(memory_space=pltpu.MemorySpace.VMEM)] * 5,
        out_specs=pl.BlockSpec(memory_space=pltpu.MemorySpace.VMEM),
        cost_estimate=cost,
    )(x2, wf_t, wfc1_t, wfc23, biases)

    return out.reshape(Bn, 10, 10)


def reference_forward(x, params):
    """Pure-JAX f32 replica of the PyTorch forward (unfused) for verification."""
    (w1, b1, w2, b2, wfc1, bfc1, wfc2, bfc2, wfc3, bfc3) = params
    Bn = x.shape[0]
    xf = x.reshape(Bn, T, HW)
    mix = jnp.einsum('bth,nh->bnt', xf, w1.reshape(NVNUM, HW)) + b1[None, :, None]
    y = jnp.einsum('bnt,ct->bcn', mix, w2.reshape(NCURVE, T)) + b2[None, :, None]
    y = jnp.maximum(y, 0.0)
    flat = y.reshape(Bn, NFLAT)                     # c-major, matches torch .view
    h1 = jnp.maximum(flat @ wfc1.T + bfc1, 0.0)
    h2 = jax.nn.sigmoid(h1 @ wfc2.T + bfc2)
    h3 = h2 @ wfc3.T + bfc3
    return jax.nn.softmax(h3, axis=1).reshape(Bn, 10, 10)


def init_params(key):
    ks = jax.random.split(key, 10)

    def u(k, shape, fan_in):
        bound = 1.0 / jnp.sqrt(jnp.float32(fan_in))
        return jax.random.uniform(k, shape, jnp.float32, -bound, bound)

    w1 = u(ks[0], (NVNUM, 1, 1, IMG, IMG), HW)         # convMix1.weight
    b1 = u(ks[1], (NVNUM,), HW)                        # convMix1.bias
    w2 = u(ks[2], (NCURVE, 1, 1, T), T)                # convCurve.weight
    b2 = u(ks[3], (NCURVE,), T)                        # convCurve.bias
    wfc1 = u(ks[4], (HID, NFLAT), NFLAT)
    bfc1 = u(ks[5], (HID,), NFLAT)
    wfc2 = u(ks[6], (HID, HID), HID)
    bfc2 = u(ks[7], (HID,), HID)
    wfc3 = u(ks[8], (OUT, HID), HID)
    bfc3 = u(ks[9], (OUT,), HID)
    return (w1, b1, w2, b2, wfc1, bfc1, wfc2, bfc2, wfc3, bfc3)


if __name__ == "__main__":
    key = jax.random.PRNGKey(0)
    kx, kp = jax.random.split(key)
    x = jax.random.normal(kx, (B, 1, T, IMG, IMG), jnp.float32)
    params = init_params(kp)

    prepped = prepare_params(params)                 # hoisted, runs once
    out = jax.block_until_ready(nvlocate_forward(x, prepped))
    ref = jax.block_until_ready(reference_forward(x, params))

    assert out.shape == (B, 10, 10), out.shape
    # Kernel matmuls use bf16 inputs/weights (f32 accumulation); the reference
    # is pure f32, so allow bf16-level tolerance on the softmax probabilities.
    max_err = float(jnp.max(jnp.abs(out - ref)))
    row_sum_err = float(jnp.max(jnp.abs(jnp.sum(out.reshape(B, -1), axis=1) - 1.0)))
    assert jnp.allclose(out, ref, rtol=2e-2, atol=1e-3), f"max_err={max_err}"
    assert row_sum_err < 1e-4, f"row_sum_err={row_sum_err}"
    print("KERNEL_OK")
</pallas_src>

<mosaic_0001>
module attributes {stable_mosaic.version = 11 : i64} {
  func.func @nvlocate_kernel(%arg0: memref<2x512xbf16, #tpu.memory_space<vmem>>, %arg1: memref<512x24xbf16, #tpu.memory_space<vmem>>, %arg2: memref<24x100xbf16, #tpu.memory_space<vmem>>, %arg3: memref<2x100x100xbf16, #tpu.memory_space<vmem>>, %arg4: memref<4x100xf32, #tpu.memory_space<vmem>>, %arg5: memref<2x100xf32, #tpu.memory_space<vmem>>) attributes {dimension_semantics = [], scalar_prefetch = 0 : i64, scratch_operands = 0 : i64, tpu.core_type = #tpu.core_type<tc>} {
    %c0 = arith.constant 0 : index
    %c0_0 = arith.constant 0 : index
    %0 = vector.load %arg4[%c0, %c0_0] : memref<4x100xf32, #tpu.memory_space<vmem>>, vector<1x24xf32>
    %c1 = arith.constant 1 : index
    %c0_1 = arith.constant 0 : index
    %1 = vector.load %arg4[%c1, %c0_1] : memref<4x100xf32, #tpu.memory_space<vmem>>, vector<1x100xf32>
    %c2 = arith.constant 2 : index
    %c0_2 = arith.constant 0 : index
    %2 = vector.load %arg4[%c2, %c0_2] : memref<4x100xf32, #tpu.memory_space<vmem>>, vector<1x100xf32>
    %c3 = arith.constant 3 : index
    %c0_3 = arith.constant 0 : index
    %3 = vector.load %arg4[%c3, %c0_3] : memref<4x100xf32, #tpu.memory_space<vmem>>, vector<1x100xf32>
    %c0_4 = arith.constant 0 : index
    %c0_5 = arith.constant 0 : index
    %4 = vector.load %arg0[%c0_4, %c0_5] : memref<2x512xbf16, #tpu.memory_space<vmem>>, vector<2x512xbf16>
    %c0_6 = arith.constant 0 : index
    %c0_7 = arith.constant 0 : index
    %5 = vector.load %arg1[%c0_6, %c0_7] : memref<512x24xbf16, #tpu.memory_space<vmem>>, vector<512x24xbf16>
    %cst = arith.constant dense<0.000000e+00> : vector<2x24xf32>
    %6 = tpu.matmul %4, %5, %cst {dimension_numbers = #tpu.dot_dimension_numbers<[1], [0], [0], [1], [0, 0, 1, 1], [], []>} : vector<2x512xbf16>, vector<512x24xbf16>, vector<2x24xf32> -> vector<2x24xf32>
    %7 = vector.broadcast %0 : vector<1x24xf32> to vector<2x24xf32>
    %8 = arith.addf %6, %7 : vector<2x24xf32>
    %cst_8 = arith.constant 0.000000e+00 : f32
    %9 = vector.broadcast %cst_8 : f32 to vector<2x24xf32>
    %10 = arith.maximumf %8, %9 : vector<2x24xf32>
    %c0_9 = arith.constant 0 : index
    %c0_10 = arith.constant 0 : index
    %11 = vector.load %arg2[%c0_9, %c0_10] : memref<24x100xbf16, #tpu.memory_space<vmem>>, vector<24x100xbf16>
    %cst_11 = arith.constant dense<0.000000e+00> : vector<2x100xf32>
    %12 = tpu.matmul %10, %11, %cst_11 {dimension_numbers = #tpu.dot_dimension_numbers<[1], [0], [0], [1], [0, 0, 1, 1], [], []>} : vector<2x24xf32>, vector<24x100xbf16>, vector<2x100xf32> -> vector<2x100xf32>
    %13 = vector.broadcast %1 : vector<1x100xf32> to vector<2x100xf32>
    %14 = arith.addf %12, %13 : vector<2x100xf32>
    %cst_12 = arith.constant 0.000000e+00 : f32
    %15 = vector.broadcast %cst_12 : f32 to vector<2x100xf32>
    %16 = arith.maximumf %14, %15 : vector<2x100xf32>
    %c0_13 = arith.constant 0 : index
    %c0_14 = arith.constant 0 : index
    %c0_15 = arith.constant 0 : index
    %17 = vector.load %arg3[%c0_13, %c0_14, %c0_15] : memref<2x100x100xbf16, #tpu.memory_space<vmem>>, vector<1x100x100xbf16>
    %18 = vector.shape_cast %17 : vector<1x100x100xbf16> to vector<100x100xbf16>
    %cst_16 = arith.constant dense<0.000000e+00> : vector<2x100xf32>
    %19 = tpu.matmul %16, %18, %cst_16 {dimension_numbers = #tpu.dot_dimension_numbers<[1], [0], [0], [1], [0, 0, 1, 1], [], []>} : vector<2x100xf32>, vector<100x100xbf16>, vector<2x100xf32> -> vector<2x100xf32>
    %20 = vector.broadcast %2 : vector<1x100xf32> to vector<2x100xf32>
    %21 = arith.addf %19, %20 : vector<2x100xf32>
    %cst_17 = arith.constant 0.000000e+00 : f32
    %22 = vector.broadcast %cst_17 : f32 to vector<2x100xf32>
    %23 = arith.subf %22, %21 : vector<2x100xf32>
    %24 = math.exp %23 : vector<2x100xf32>
    %cst_18 = arith.constant 1.000000e+00 : f32
    %25 = vector.broadcast %cst_18 : f32 to vector<2x100xf32>
    %26 = arith.addf %25, %24 : vector<2x100xf32>
    %cst_19 = arith.constant 1.000000e+00 : f32
    %27 = vector.broadcast %cst_19 : f32 to vector<2x100xf32>
    %28 = arith.divf %27, %26 : vector<2x100xf32>
    %c1_20 = arith.constant 1 : index
    %c0_21 = arith.constant 0 : index
    %c0_22 = arith.constant 0 : index
    %29 = vector.load %arg3[%c1_20, %c0_21, %c0_22] : memref<2x100x100xbf16, #tpu.memory_space<vmem>>, vector<1x100x100xbf16>
    %30 = vector.shape_cast %29 : vector<1x100x100xbf16> to vector<100x100xbf16>
    %cst_23 = arith.constant dense<0.000000e+00> : vector<2x100xf32>
    %31 = tpu.matmul %28, %30, %cst_23 {dimension_numbers = #tpu.dot_dimension_numbers<[1], [0], [0], [1], [0, 0, 1, 1], [], []>} : vector<2x100xf32>, vector<100x100xbf16>, vector<2x100xf32> -> vector<2x100xf32>
    %32 = vector.broadcast %3 : vector<1x100xf32> to vector<2x100xf32>
    %33 = arith.addf %31, %32 : vector<2x100xf32>
    %cst_24 = arith.constant dense<0xFF800000> : vector<2xf32>
    %34 = vector.multi_reduction <maximumf>, %33, %cst_24 [1] : vector<2x100xf32> to vector<2xf32>
    %35 = vector.shape_cast %34 : vector<2xf32> to vector<2x1xf32>
    %36 = vector.broadcast %35 : vector<2x1xf32> to vector<2x100xf32>
    %37 = arith.subf %33, %36 : vector<2x100xf32>
    %38 = math.exp %37 : vector<2x100xf32>
    %cst_25 = arith.constant dense<0.000000e+00> : vector<2xf32>
    %39 = vector.multi_reduction <add>, %38, %cst_25 [1] : vector<2x100xf32> to vector<2xf32>
    %40 = vector.shape_cast %39 : vector<2xf32> to vector<2x1xf32>
    %41 = vector.broadcast %40 : vector<2x1xf32> to vector<2x100xf32>
    %42 = arith.divf %38, %41 : vector<2x100xf32>
    %c0_26 = arith.constant 0 : index
    %c0_27 = arith.constant 0 : index
    %43 = vector.load %arg5[%c0_26, %c0_27] : memref<2x100xf32, #tpu.memory_space<vmem>>, vector<2x100xf32>
    tpu.vector_store %arg5[%c0_26, %c0_27], %42 {strides = array<i32>} : memref<2x100xf32, #tpu.memory_space<vmem>>, vector<2x100xf32>,
    return
  }
}

</mosaic_0001>

<bundles_post_ra>
// kernel: nvlocate_forward.1
= control target key start
LH: loop header
LB: loop body
LE: loop exit
PB: predicated region body
PF: predicated region fallthrough
CT: control target
= control target key end

     0   :  { %v917_v22 = vmov 1966171168   ;;  %v106_v24 = vlaneseq  ;;  %vm416_vm0 = vcmask 1043456   ;;  %v918_v45 = vmov 0.0   ;;  %s1141_s1 = inlined_call_operand.vmem [shape: bf16[512,24], index: 1, kind: input, shape index: {}]   ;;  %s1142_s0 = inlined_call_operand.vmem [shape: bf16[2,512], index: 0, kind: input, shape index: {}]   ;;  %s1143_s2 = inlined_call_operand.vmem [shape: bf16[24,100], index: 2, kind: input, shape index: {}]   ;;  %s1144_s3 = inlined_call_operand.vmem [shape: bf16[2,100,100], index: 3, kind: input, shape index: {}]   ;;  %s1145_s4 = inlined_call_operand.vmem [shape: f32[4,100], index: 4, kind: input, shape index: {}]   ;;  %s1146_s5 = inlined_call_operand.vmem [shape: f32[2,100], index: 5, kind: output, shape index: {}]  }
   0x1   :  { %v861_v0 = vld [vmem:[%s1141_s1 + $0x78] sm:$0xff]   ;;  %v865_v4 = vld [vmem:[%s1141_s1 + $0x70] sm:$0xff]   ;;  %v869_v8 = vld [vmem:[%s1141_s1 + $0x68] sm:$0xff]   ;;  %v104_v23 = vunpack.c.l.s4 %v917_v22  ;;  %vm919_vm1 = vmmov 0   ;;  %vm519_vm2 = vcmask 1041408   ;;  %vm412_vm3 = vcmask 195584  }
   0x2   :  { %v862_v1 = vld [vmem:[%s1141_s1 + $0xf8] sm:$0xff]   ;;  %754 = vmatprep.subr.bf16.mxu0 %v861_v0  ;;  %v866_v5 = vld [vmem:[%s1141_s1 + $0xf0] sm:$0xff]   ;;  %v870_v9 = vld [vmem:[%s1141_s1 + $0xe8] sm:$0xff]   ;;  %v107_v30 = vshrl.u32 %v106_v24, 7  ;;  %vm515_vm4 = vcmask 818176   ;;  %vm668_vm5 = vcmask 812032  }
   0x3   :  { %v863_v2 = vld [vmem:[%s1141_s1 + $0x38] sm:$0xff]   ;;  %776 = vmatprep.subr.bf16.mxu1 %v862_v1  ;;  %v867_v6 = vld [vmem:[%s1141_s1 + $0x30] sm:$0xff]   ;;  %v871_v10 = vld [vmem:[%s1141_s1 + $0x28] sm:$0xff]   ;;  %v105_v29 = vunpack.c.0.s8 %v104_v23 }
   0x4   :  { %v864_v3 = vld [vmem:[%s1141_s1 + $0xb8] sm:$0xff]   ;;  %755 = vmatpush3.bf16.msra.mxu0 %v863_v2  ;;  %v868_v7 = vld [vmem:[%s1141_s1 + $0xb0] sm:$0xff]   ;;  %v872_v11 = vld [vmem:[%s1141_s1 + $0xa8] sm:$0xff]  }
   0x5   :  { %777 = vmatpush3.bf16.msra.mxu1 %v864_v3  ;;  %756 = vmatprep.subr.bf16.mxu0 %v865_v4  ;;  %v873_v12 = vld [vmem:[%s1141_s1 + $0x60] sm:$0xff]   ;;  %v877_v16 = vld [vmem:[%s1141_s1 + $0x58] sm:$0xff]   ;;  %v881_v20 = vld [vmem:[%s1141_s1 + $0x50] sm:$0xff]   ;;  %v108_v35 = vsub.s32 %v105_v29, %v107_v30 }
   0x6   :  { %778 = vmatprep.subr.bf16.mxu1 %v866_v5  ;;  %v874_v13 = vld [vmem:[%s1141_s1 + $0xe0] sm:$0xff]   ;;  %v878_v17 = vld [vmem:[%s1141_s1 + $0xd8] sm:$0xff]   ;;  %v882_v21 = vld [vmem:[%s1141_s1 + $0xd0] sm:$0xff]  }
   0x7   :  { %v875_v14 = vld [vmem:[%s1141_s1 + $0x20] sm:$0xff]   ;;  %v879_v18 = vld [vmem:[%s1141_s1 + $0x18] sm:$0xff]   ;;  %v883_v25 = vld [vmem:[%s1141_s1 + $0x10] sm:$0xff]  }
   0x8   :  { %757 = vmatpush3.bf16.msra.mxu0 %v867_v6  ;;  %v876_v15 = vld [vmem:[%s1141_s1 + $0xa0] sm:$0xff]   ;;  %v880_v19 = vld [vmem:[%s1141_s1 + $0x98] sm:$0xff]   ;;  %v884_v26 = vld [vmem:[%s1141_s1 + $0x90] sm:$0xff]  }
   0x9   :  { %779 = vmatpush3.bf16.msra.mxu1 %v868_v7  ;;  %758 = vmatprep.subr.bf16.mxu0 %v869_v8  ;;  %v885_v27 = vld [vmem:[%s1141_s1 + $0x48] sm:$0xff]   ;;  %v889_v33 = vld [vmem:[%s1141_s1 + $0x40] sm:$0xff]   ;;  %v895_v48 = vld [vmem:[%s1144_s3 + $0x30] ss:$0 sps:$4 sm:$0x33]  }
   0xa   :  { %780 = vmatprep.subr.bf16.mxu1 %v870_v9  ;;  %v886_v28 = vld [vmem:[%s1141_s1 + $0xc8] sm:$0xff]   ;;  %v890_v34 = vld [vmem:[%s1141_s1 + $0xc0] sm:$0xff]   ;;  %v521_v49 = vsel %vm519_vm2, %v895_v48, 0  ;;  %v898_v52 = vld [vmem:[%s1144_s3 + $0x18] sm:$0xff]  }
   0xb   :  { %v887_v31 = vld [vmem:[%s1141_s1 + $0x8] sm:$0xff]   ;;  %v891_v36 = vld [vmem:[%s1141_s1] sm:$0xff]   ;;  %v899_v53 = vld [vmem:[%s1144_s3 + $0x10] sm:$0xff]  }
   0xc   :  { %759 = vmatpush3.bf16.msra.mxu0 %v871_v10  ;;  %v888_v32 = vld [vmem:[%s1141_s1 + $0x88] sm:$0xff]   ;;  %v892_v37 = vld [vmem:[%s1141_s1 + $0x80] sm:$0xff]  }
   0xd   :  { %781 = vmatpush3.bf16.msra.mxu1 %v872_v11  ;;  %760 = vmatprep.subr.bf16.mxu0 %v873_v12  ;;  %v686_v38 = vld.sshfl [vmem:[%s1142_s0] sm:$0x33 pattern:$0x75316420]  ;;  %v893_v44 = vld [vmem:[%s1143_s2 + $0x8] ss:$0 sps:$4 sm:$0xff]  }
   0xe   :  { %782 = vmatprep.subr.bf16.mxu1 %v874_v13  ;;  %v102_v39 = vcombine.high %v686_v38, %v686_v38  ;;  %v109_v40 = vrot.slane %v686_v38, %v108_v35  ;;  %v418_v46 = vsel %vm416_vm0, %v893_v44, 0  ;;  %v894_v47 = vld [vmem:[%s1143_s2] sm:$0xff]   ;;  %v896_v50 = vld [vmem:[%s1144_s3 + $0x28] sm:$0xff]  }
   0xf   :  { %v897_v51 = vld [vmem:[%s1144_s3 + $0x20] sm:$0xff]   ;;  %v900_v54 = vld [vmem:[%s1144_s3 + $0x8] sm:$0xff]  }
  0x10   :  { %761 = vmatpush3.bf16.msra.mxu0 %v875_v14  ;;  %v116_v41 = vrot.slane %v102_v39, %v108_v35  ;;  %v117_v42 = vcombine.high %v109_v40, %v109_v40  ;;  %v685_v57 = vld [vmem:[%s1145_s4] ss:$0 sm:$0xff]  ;;  %v719_v6 = vld [vmem:[%s1145_s4 + $0x1] ss:$0 sm:$0xff]  ;;  %v904_v14 = vld [vmem:[%s1144_s3 + $0x54] sm:$0xff]  }
  0x11   :  { %783 = vmatpush3.bf16.msra.mxu1 %v876_v15  ;;  %762 = vmatprep.subr.bf16.mxu0 %v877_v16  ;;  %v901_v5 = vld [vmem:[%s1144_s3] sm:$0xff]   ;;  %v905_v15 = vld [vmem:[%s1144_s3 + $0x4c] sm:$0xff]  }
  0x12   :  { %784 = vmatprep.subr.bf16.mxu1 %v878_v17  ;;  %347 = vmatprep.mubr.bf16.mxu0 %v116_v41  ;;  %v118_v43 = vcombine.high %v116_v41, %v116_v41  ;;  %v902_v11 = vld [vmem:[%s1144_s3 + $0x64] ss:$0 sps:$4 sm:$0x33]   ;;  %v903_v13 = vld [vmem:[%s1144_s3 + $0x5c] sm:$0xff]  }
  0x13   :  { %v628_v12 = vsel %vm519_vm2, %v902_v11, 0  ;;  %v906_v16 = vld [vmem:[%s1144_s3 + $0x44] sm:$0xff]   ;;  %v907_v17 = vld [vmem:[%s1144_s3 + $0x3c] sm:$0xff]  }
  0x14   :  { %763 = vmatpush3.bf16.msra.mxu0 %v879_v18  ;;  %387 = vmatprep.mubr.bf16.mxu1 %v118_v43  ;;  %v908_v18 = vld [vmem:[%s1144_s3 + $0x34] sm:$0xff]  }
  0x15   :  { %785 = vmatpush3.bf16.msra.mxu1 %v880_v19  ;;  %764 = vmatprep.subr.bf16.mxu0 %v881_v20  ;;  %v723_v19 = vld [vmem:[%s1145_s4 + $0x2] ss:$0 sm:$0xff] }
  0x16   :  { %786 = vmatprep.subr.bf16.mxu1 %v882_v21 }
  0x18   :  { %765 = vmatpush3.bf16.msra.mxu0 %v883_v25 }
  0x19   :  { %787 = vmatpush3.bf16.msra.mxu1 %v884_v26  ;;  %766 = vmatprep.subr.bf16.mxu0 %v885_v27 }
  0x1a   :  { %788 = vmatprep.subr.bf16.mxu1 %v886_v28  ;;  %v745_v28 = vld [vmem:[%s1145_s4 + $0x3] ss:$0 sm:$0xff] }
  0x1c   :  { %767 = vmatpush3.bf16.msra.mxu0 %v887_v31 }
  0x1d   :  { %789 = vmatpush3.bf16.msra.mxu1 %v888_v32  ;;  %768 = vmatprep.subr.bf16.mxu0 %v889_v33 }
  0x1e   :  { %790 = vmatprep.subr.bf16.mxu1 %v890_v34 }
  0x20   :  { %769 = vmatpush3.bf16.msra.mxu0 %v891_v36 }
  0x21   :  { %791 = vmatpush3.bf16.msra.mxu1 %v892_v37  ;;  %817 = vmatprep.subr.bf16.mxu0 %v918_v45 }
  0x22   :  { %824 = vmatprep.subr.bf16.mxu1 %v918_v45 }
  0x23   :  { %348 = vmatmul.mubr.bf16.vlgmr.msra.gmra.mxu0 %v109_v40 }
  0x24   :  { %388 = vmatmul.mubr.bf16.vlgmr.msra.gmra.mxu1 %v117_v42  ;;  %818 = vmatpush3.bf16.msra.mxu0 %v418_v46 }
  0x25   :  { %819 = vmatprep.subr.bf16.mxu0 %v918_v45  ;;  %821 = vmatprep.mubr.msk.f32.mxu0 %vm919_vm1, %v918_v45 }
  0x26   :  { %838 = vmatprep.mubr.msk.f32.mxu1 %vm919_vm1, %v918_v45  ;;  %825 = vmatpush3.bf16.msra.mxu1 %v521_v49 }
  0x27   :  { %826 = vmatprep.subr.bf16.mxu1 %v918_v45 }
  0x28   :  { %820 = vmatpush3.bf16.msra.mxu0 %v894_v47 }
  0x29   :  { %841 = vmatprep.subr.bf16.mxu0 %v918_v45 }
  0x2a   :  { %827 = vmatpush3.bf16.msra.mxu1 %v896_v50 }
  0x2b   :  { %828 = vmatprep.subr.bf16.mxu1 %v918_v45 }
  0x2e   :  { %829 = vmatpush3.bf16.msra.mxu1 %v897_v51 }
  0x2f   :  { %830 = vmatprep.subr.bf16.mxu1 %v918_v45 }
  0x32   :  { %831 = vmatpush3.bf16.msra.mxu1 %v898_v52 }
  0x33   :  { %832 = vmatprep.subr.bf16.mxu1 %v918_v45 }
  0x36   :  { %833 = vmatpush3.bf16.msra.mxu1 %v899_v53 }
  0x37   :  { %834 = vmatprep.subr.bf16.mxu1 %v918_v45 }
  0x3a   :  { %835 = vmatpush3.bf16.msra.mxu1 %v900_v54 }
  0x3b   :  { %836 = vmatprep.subr.bf16.mxu1 %v918_v45 }
  0x3e   :  { %837 = vmatpush3.bf16.msra.mxu1 %v901_v5 }
  0xe3   :  { %v770_v55 = vpop.f32.mrf.mxu0 }
  0xe4   :  { %v792_v56 = vpop.f32.mrf.mxu1 }
  0xe5   :  { %v771_v58 = vpop.f32.mrf.mxu0 }
  0xe6   :  { %v772_v59 = vadd.f32 %v771_v58, %v770_v55  ;;  %v793_v60 = vpop.f32.mrf.mxu1 }
  0xe7   :  { %v773_v61 = vpop.f32.mrf.mxu0  ;;  %v794_v63 = vadd.f32 %v793_v60, %v792_v56 }
  0xe8   :  { %v350_v62 = vadd.f32 %v772_v59, %v685_v57  ;;  %v795_v0 = vpop.f32.mrf.mxu1 }
  0xe9   :  { %v774_v1 = vpop.f32.mrf.mxu0 }
  0xea   :  { %v390_v2 = vadd.f32 %v794_v63, %v350_v62  ;;  %v796_v3 = vpop.f32.mrf.mxu1 }
  0xec   :  { %v395_v4 = vmax.f32 %v390_v2, 0.0 }
  0xee   :  { %822 = vmatmul.mubr.msk.f32.vlgmr.msra.gmra.mxu0 %vm412_vm3, %v395_v4 }
  0xef   :  { %855 = vmatprep.mubr.msk.f32.mxu0 %vm919_vm1, %v918_v45  ;;  %842 = vmatpush3.bf16.msra.mxu0 %v628_v12 }
  0xf0   :  { %843 = vmatprep.subr.bf16.mxu0 %v918_v45 }
  0xf3   :  { %844 = vmatpush3.bf16.msra.mxu0 %v903_v13 }
  0xf4   :  { %845 = vmatprep.subr.bf16.mxu0 %v918_v45 }
  0xf7   :  { %846 = vmatpush3.bf16.msra.mxu0 %v904_v14 }
  0xf8   :  { %847 = vmatprep.subr.bf16.mxu0 %v918_v45 }
  0xfb   :  { %848 = vmatpush3.bf16.msra.mxu0 %v905_v15 }
  0xfc   :  { %849 = vmatprep.subr.bf16.mxu0 %v918_v45 }
  0xff   :  { %850 = vmatpush3.bf16.msra.mxu0 %v906_v16 }
 0x100   :  { %851 = vmatprep.subr.bf16.mxu0 %v918_v45 }
 0x103   :  { %852 = vmatpush3.bf16.msra.mxu0 %v907_v17 }
 0x104   :  { %853 = vmatprep.subr.bf16.mxu0 %v918_v45 }
 0x107   :  { %854 = vmatpush3.bf16.msra.mxu0 %v908_v18 }
 0x1ae   :  { %v454_v7 = vpop.f32.mrf.mxu0 }
 0x1af   :  { %v455_v8 = vadd.f32 %v719_v6, %v454_v7 }
 0x1b0   :  { %v823_v9 = vpop.f32.mrf.mxu0 }
 0x1b1   :  { %v458_v10 = vmax.f32 %v455_v8, 0.0 }
 0x1b3   :  { %839 = vmatmul.mubr.msk.f32.vlgmr.msra.gmra.mxu1 %vm515_vm4, %v458_v10 }
 0x273   :  { %v557_v20 = vpop.f32.mrf.mxu1 }
 0x274   :  { %v558_v21 = vadd.f32 %v723_v19, %v557_v20 }
 0x275   :  { %v840_v22 = vpop.f32.mrf.mxu1 }
 0x276   :  { %v561_v23 = vsub.f32 0.0, %v558_v21 }
 0x278   :  { %v562_v24 = vmul.f32 1.442695, %v561_v23 }
 0x27a   :  { %909 = vpow2.f32 %v562_v24 }
 0x287   :  { %v910_v25 = vpop.eup %909 }
 0x288   :  { %v564_v26 = vadd.f32 1.0, %v910_v25 }
 0x28a   :  { %911 = vrcp.f32 %v564_v26 }
 0x297   :  { %v912_v27 = vpop.eup %911 }
 0x298   :  { %856 = vmatmul.mubr.msk.f32.vlgmr.msra.gmra.mxu0 %vm515_vm4, %v912_v27 }
 0x358   :  { %v664_v29 = vpop.f32.mrf.mxu0 }
 0x359   :  { %v665_v30 = vadd.f32 %v745_v28, %v664_v29 }
 0x35a   :  { %v857_v31 = vpop.f32.mrf.mxu0 }
 0x35b   :  { %v669_v32 = vsel %vm668_vm5, %v665_v30, -inf }
 0x35c   :  { %670 = vmax.xlane.f32.xlu0 %v669_v32 }
 0x3e5   :  { %v671_v33 = vpop.xlane.xlu0 %670 }
 0x3e6   :  { %v672_v34 = vsub.f32 %v665_v30, %v671_v33 }
 0x3e8   :  { %v673_v35 = vmul.f32 1.442695, %v672_v34 }
 0x3ea   :  { %913 = vpow2.f32 %v673_v35 }
 0x3f7   :  { %v914_v36 = vpop.eup %913 }
 0x3f8   :  { %v675_v37 = vsel %vm668_vm5, %v914_v36, 0.0 }
 0x3f9   :  { %676 = vadd.xlane.f32.xlu0 %v675_v37 }
 0x482   :  { %v677_v38 = vpop.xlane.xlu0 %676 }
 0x483   :  { %915 = vrcp.f32 %v677_v38 }
 0x490   :  { %v916_v39 = vpop.eup %915 }
 0x491   :  { %v679_v40 = vmul.f32 %v916_v39, %v914_v36 }
 0x493   :  { %680 = vst.msk [vmem:[%s1146_s5] sm:$0x3] %vm668_vm5, %v679_v40 }

</bundles_post_ra>
